<compile_context>
chip_gen: v6e
topology: v6e:2x2x1
jax: 0.10.0
libtpu: 0.0.40
codegen_flags: <defaults>
</compile_context>

<pallas_src>
import functools

import jax
import jax.numpy as jnp
from jax import lax
from jax.experimental import pallas as pl
from jax.experimental.pallas import tpu as pltpu


def _mha_kernel(x_ref, wqkv_ref, pad_ref, o_ref, *, n_head, head_size):
    # x_ref:    (T, C)          f32  (one batch element; cast to bf16 in-kernel)
    # wqkv_ref: (C, 3*n_head*H) bf16, layout [Q_all | K_all | V_all]
    # pad_ref:  (1, T)          f32, 1.0 == padded key position
    # o_ref:    (T, n_head*H)   f32, heads concatenated along lanes (lane-dense store)
    T, C = x_ref.shape
    H = head_size
    d = n_head * H

    # Fused Q/K/V projection for all heads: one MXU matmul with N = 3*n_head*H.
    x_bf16 = x_ref[...].astype(jnp.bfloat16)
    qkv = jnp.dot(x_bf16, wqkv_ref[...],
                  preferred_element_type=jnp.float32)          # (T, 3d) f32

    scale = jnp.float32(C) ** jnp.float32(-0.5)                # C**-0.5 as in the reference
    row = lax.broadcasted_iota(jnp.int32, (T, T), 0)
    col = lax.broadcasted_iota(jnp.int32, (T, T), 1)
    causal = col <= row                                        # (T, T) bool
    pad = pad_ref[...]                                         # (1, T), broadcasts over rows

    outs = []
    for h in range(n_head):                                    # static unroll (n_head small)
        qh = qkv[:, h * H:(h + 1) * H].astype(jnp.bfloat16)            # (T, H)
        kh = qkv[:, d + h * H:d + (h + 1) * H].astype(jnp.bfloat16)    # (T, H)
        vh = qkv[:, 2 * d + h * H:2 * d + (h + 1) * H].astype(jnp.bfloat16)

        # Scores: contract head dim of both operands (q @ k^T) without an explicit .T.
        s = lax.dot_general(qh, kh, (((1,), (1,)), ((), ())),
                            preferred_element_type=jnp.float32) * scale  # (T, T)

        # Causal mask with a large finite fill (identical to -inf after softmax, no NaN
        # hazard); padding mask kept as a second select so fully-padded rows match the
        # reference exactly.
        s = jnp.where(causal, s, jnp.float32(-1e30))
        s = jnp.where(pad > 0.5, jnp.float32(-1e9), s)

        # Numerically stable softmax in f32; reciprocal routed to the EUP.
        m = jnp.max(s, axis=-1, keepdims=True)
        e = jnp.exp(s - m)
        p = e * pl.reciprocal(jnp.sum(e, axis=-1, keepdims=True), approx=True)

        # TODO(synk): training-mode dropout on p via pltpu PRNG not implemented (eval-mode identity).
        outs.append(jnp.dot(p.astype(jnp.bfloat16), vh,
                            preferred_element_type=jnp.float32))          # (T, H) f32

    o_ref[...] = jnp.concatenate(outs, axis=-1)                # (T, n_head*H) lane-dense


def prepare_fused_qkv_weights(wq_heads, wk_heads, wv_heads,
                              matmul_dtype=jnp.bfloat16):
    """Build the fused weight ONCE at parameter-init time (hoisted out of the hot path).

    wq_heads/wk_heads/wv_heads: (n_head, C, H) f32.
    Returns (C, 3*n_head*H) bf16 laid out [Q_all | K_all | V_all]; for n_head*H == 128
    each section starts on a 128-lane boundary.
    """
    def flat(w):  # (NH, C, H) -> (C, NH*H), heads concatenated along columns
        return jnp.transpose(w, (1, 0, 2)).reshape(w.shape[1], -1)
    return jnp.concatenate([flat(wq_heads), flat(wk_heads), flat(wv_heads)],
                           axis=1).astype(matmul_dtype)


def fused_causal_attention_heads(x, w_qkv_fused, padding_mask=None, *,
                                 n_head, head_size):
    """x: (B, T, C) f32; w_qkv_fused: (C, 3*n_head*head_size) bf16 (see prepare_fused_qkv_weights);
    padding_mask: (B, T) bool or None.  Returns (B, T, n_head*head_size) f32 with the
    per-head outputs of CausalSelfAttentionHead concatenated along the last dim."""
    B, T, C = x.shape
    d = n_head * head_size
    assert w_qkv_fused.shape == (C, 3 * d)

    if padding_mask is None:
        pad = jnp.zeros((B, 1, T), dtype=jnp.float32)
    else:
        pad = padding_mask.astype(jnp.float32).reshape(B, 1, T)

    kernel = functools.partial(_mha_kernel, n_head=n_head, head_size=head_size)

    flops = 2 * B * T * C * 3 * d + 4 * B * n_head * T * T * head_size
    bytes_accessed = (x.size * 4 + w_qkv_fused.size * 2 + B * T * 4 + B * T * d * 4)

    return pl.pallas_call(
        kernel,
        out_shape=jax.ShapeDtypeStruct((B, T, d), jnp.float32),
        grid=(B,),  # parallel over batch: shards across v7x's 2 TCs, no-op on v5e/v6e
        in_specs=[
            pl.BlockSpec((None, T, C), lambda b: (b, 0, 0)),      # x, squeezed to (T, C)
            pl.BlockSpec((C, 3 * d), lambda b: (0, 0)),           # fused [Q|K|V] weights
            pl.BlockSpec((None, 1, T), lambda b: (b, 0, 0)),      # padding indicator
        ],
        out_specs=pl.BlockSpec((None, T, d), lambda b: (b, 0, 0)),  # lane-dense (T, 128) store
        compiler_params=pltpu.CompilerParams(dimension_semantics=("parallel",)),
        cost_estimate=pl.CostEstimate(flops=flops,
                                      transcendentals=B * n_head * T * T,
                                      bytes_accessed=bytes_accessed),
    )(x, w_qkv_fused, pad)


def causal_self_attention_head(x, wq, wk, wv, padding_mask=None,
                               matmul_dtype=jnp.bfloat16):
    """Single-head convenience wrapper matching CausalSelfAttentionHead.forward exactly.
    x: (B, T, C) f32; wq/wk/wv: (C, H) f32; padding_mask: (B, T) bool or None."""
    H = wq.shape[1]
    w_fused = jnp.concatenate([wq, wk, wv], axis=1).astype(matmul_dtype)  # (C, 3H)
    return fused_causal_attention_heads(x, w_fused, padding_mask,
                                        n_head=1, head_size=H)


def _reference(x, wq, wk, wv, padding_mask=None, matmul_dtype=jnp.float32):
    """Pure-JAX single-head reference mirroring the module; matmul_dtype lets it mirror
    the kernel's bf16 matmul operands (f32 accumulation) for a tight comparison."""
    B, T, C = x.shape
    hp = dict(preferred_element_type=jnp.float32, precision=lax.Precision.HIGHEST)
    xm = x.astype(matmul_dtype)
    q = jnp.einsum("btc,ch->bth", xm, wq.astype(matmul_dtype), **hp)
    k = jnp.einsum("btc,ch->bth", xm, wk.astype(matmul_dtype), **hp)
    v = jnp.einsum("btc,ch->bth", xm, wv.astype(matmul_dtype), **hp)
    wei = jnp.einsum("bqh,bkh->bqk", q, k, **hp) * (C ** -0.5)
    tril = jnp.tril(jnp.ones((T, T), dtype=bool))
    wei = jnp.where(tril, wei, -jnp.inf)
    if padding_mask is not None:
        wei = jnp.where(padding_mask[:, None, :], -1e9, wei)
    wei = jax.nn.softmax(wei, axis=-1)
    return jnp.einsum("bqk,bkh->bqh", wei, v, **hp)


def _fused_reference(x, wqs, wks, wvs, padding_mask=None, matmul_dtype=jnp.bfloat16):
    return jnp.concatenate(
        [_reference(x, wqs[h], wks[h], wvs[h], padding_mask, matmul_dtype)
         for h in range(wqs.shape[0])], axis=-1)


if __name__ == "__main__":
    # WherePTConfig defaults: n_embed=128, n_head=4 -> head_size=32, block_size=8
    B, T, C = 2, 8, 128
    NH, H = 4, 32

    key = jax.random.PRNGKey(0)
    kx, kq, kk, kv = jax.random.split(key, 4)
    x = jax.random.normal(kx, (B, T, C), dtype=jnp.float32)
    # deterministic per-head parameters (nn.Linear-like scale 1/sqrt(C))
    wq = jax.random.normal(kq, (NH, C, H), dtype=jnp.float32) * (C ** -0.5)
    wk = jax.random.normal(kk, (NH, C, H), dtype=jnp.float32) * (C ** -0.5)
    wv = jax.random.normal(kv, (NH, C, H), dtype=jnp.float32) * (C ** -0.5)

    # Fused weight built once at "init time" (hoisted out of the per-call hot path).
    w_fused = prepare_fused_qkv_weights(wq, wk, wv)            # (128, 384) bf16

    # --- all heads fused, no padding mask ---
    out = jax.block_until_ready(
        fused_causal_attention_heads(x, w_fused, None, n_head=NH, head_size=H))
    assert out.shape == (B, T, NH * H)
    ref_b = _fused_reference(x, wq, wk, wv, None, matmul_dtype=jnp.bfloat16)
    ref_f = _fused_reference(x, wq, wk, wv, None, matmul_dtype=jnp.float32)
    assert jnp.allclose(out, ref_b, atol=1e-2, rtol=1e-2), "mismatch vs bf16-matmul reference"
    assert jnp.allclose(out, ref_f, atol=1e-1, rtol=1e-1), "mismatch vs f32 reference"

    # --- all heads fused, with a padding mask (pad the last two keys of batch element 1) ---
    pad_mask = jnp.zeros((B, T), dtype=bool).at[1, -2:].set(True)
    out_p = jax.block_until_ready(
        fused_causal_attention_heads(x, w_fused, pad_mask, n_head=NH, head_size=H))
    ref_pb = _fused_reference(x, wq, wk, wv, pad_mask, matmul_dtype=jnp.bfloat16)
    assert jnp.allclose(out_p, ref_pb, atol=1e-2, rtol=1e-2), "mismatch vs reference (padded)"

    # --- single-head path (exact module signature) ---
    out_1 = jax.block_until_ready(
        causal_self_attention_head(x, wq[0], wk[0], wv[0], pad_mask))
    assert out_1.shape == (B, T, H)
    ref_1 = _reference(x, wq[0], wk[0], wv[0], pad_mask, matmul_dtype=jnp.bfloat16)
    assert jnp.allclose(out_1, ref_1, atol=1e-2, rtol=1e-2), "mismatch vs single-head reference"

    print("KERNEL_OK")
</pallas_src>

<mosaic_0001>
module attributes {stable_mosaic.version = 11 : i64} {
  func.func @_mha_kernel(%arg0: i32, %arg1: memref<1x8x128xf32, #tpu.memory_space<vmem>>, %arg2: memref<128x384xbf16, #tpu.memory_space<vmem>>, %arg3: memref<1x1x8xf32, #tpu.memory_space<vmem>>, %arg4: memref<1x8x128xf32, #tpu.memory_space<vmem>>) attributes {dimension_semantics = [#tpu.dimension_semantics<parallel>], iteration_bounds = array<i64: 2>, scalar_prefetch = 0 : i64, scratch_operands = 0 : i64, tpu.core_type = #tpu.core_type<tc>, window_params = [{transform_indices = @transform_0, window_bounds = array<i64: 1, 8, 128>}, {pipeline_mode = #tpu.pipeline_mode<synchronous>, transform_indices = @transform_1, window_bounds = array<i64: 128, 384>}, {transform_indices = @transform_2, window_bounds = array<i64: 1, 1, 8>}, {transform_indices = @transform_3, window_bounds = array<i64: 1, 8, 128>}]} {
    %c0 = arith.constant 0 : index
    %c0_0 = arith.constant 0 : index
    %c0_1 = arith.constant 0 : index
    %0 = vector.load %arg1[%c0, %c0_0, %c0_1] : memref<1x8x128xf32, #tpu.memory_space<vmem>>, vector<1x8x128xf32>
    %1 = vector.shape_cast %0 : vector<1x8x128xf32> to vector<8x128xf32>
    %2 = arith.truncf %1 : vector<8x128xf32> to vector<8x128xbf16>
    %c0_2 = arith.constant 0 : index
    %c0_3 = arith.constant 0 : index
    %3 = vector.load %arg2[%c0_2, %c0_3] : memref<128x384xbf16, #tpu.memory_space<vmem>>, vector<128x384xbf16>
    %cst = arith.constant dense<0.000000e+00> : vector<8x384xf32>
    %4 = tpu.matmul %2, %3, %cst {dimension_numbers = #tpu.dot_dimension_numbers<[1], [0], [0], [1], [0, 0, 1, 1], [], []>} : vector<8x128xbf16>, vector<128x384xbf16>, vector<8x384xf32> -> vector<8x384xf32>
    %cst_4 = arith.constant 1.280000e+02 : f32
    %cst_5 = arith.constant -5.000000e-01 : f32
    %5 = math.powf %cst_4, %cst_5 : f32
    %6 = tpu.iota {dimensions = array<i32: 0>} : vector<8x8xi32>
    %7 = tpu.iota {dimensions = array<i32: 1>} : vector<8x8xi32>
    %8 = arith.cmpi sle, %7, %6 : vector<8x8xi32>
    %c0_6 = arith.constant 0 : index
    %c0_7 = arith.constant 0 : index
    %c0_8 = arith.constant 0 : index
    %9 = vector.load %arg3[%c0_6, %c0_7, %c0_8] : memref<1x1x8xf32, #tpu.memory_space<vmem>>, vector<1x1x8xf32>
    %10 = vector.shape_cast %9 : vector<1x1x8xf32> to vector<1x8xf32>
    %11 = vector.extract_strided_slice %4 {offsets = [0, 0], sizes = [8, 32], strides = [1, 1]} : vector<8x384xf32> to vector<8x32xf32>
    %12 = arith.truncf %11 : vector<8x32xf32> to vector<8x32xbf16>
    %13 = vector.extract_strided_slice %4 {offsets = [0, 128], sizes = [8, 32], strides = [1, 1]} : vector<8x384xf32> to vector<8x32xf32>
    %14 = arith.truncf %13 : vector<8x32xf32> to vector<8x32xbf16>
    %15 = vector.extract_strided_slice %4 {offsets = [0, 256], sizes = [8, 32], strides = [1, 1]} : vector<8x384xf32> to vector<8x32xf32>
    %16 = arith.truncf %15 : vector<8x32xf32> to vector<8x32xbf16>
    %cst_9 = arith.constant dense<0.000000e+00> : vector<8x8xf32>
    %17 = tpu.matmul %12, %14, %cst_9 {dimension_numbers = #tpu.dot_dimension_numbers<[1], [1], [0], [0], [0, 0, 1, 0], [], []>} : vector<8x32xbf16>, vector<8x32xbf16>, vector<8x8xf32> -> vector<8x8xf32>
    %18 = vector.broadcast %5 : f32 to vector<8x8xf32>
    %19 = arith.mulf %17, %18 : vector<8x8xf32>
    %cst_10 = arith.constant -1.000000e+30 : f32
    %20 = vector.broadcast %cst_10 : f32 to vector<8x8xf32>
    %21 = arith.select %8, %19, %20 : vector<8x8xi1>, vector<8x8xf32>
    %cst_11 = arith.constant 5.000000e-01 : f32
    %22 = vector.broadcast %cst_11 : f32 to vector<1x8xf32>
    %23 = arith.cmpf ogt, %10, %22 : vector<1x8xf32>
    %cst_12 = arith.constant -1.000000e+09 : f32
    %24 = vector.shape_cast %23 : vector<1x8xi1> to vector<1x8xi1>
    %25 = vector.broadcast %24 : vector<1x8xi1> to vector<8x8xi1>
    %26 = vector.broadcast %cst_12 : f32 to vector<8x8xf32>
    %27 = arith.select %25, %26, %21 : vector<8x8xi1>, vector<8x8xf32>
    %cst_13 = arith.constant dense<0xFF800000> : vector<8xf32>
    %28 = vector.multi_reduction <maximumf>, %27, %cst_13 [1] : vector<8x8xf32> to vector<8xf32>
    %29 = vector.shape_cast %28 : vector<8xf32> to vector<8x1xf32>
    %30 = vector.broadcast %29 : vector<8x1xf32> to vector<8x8xf32>
    %31 = arith.subf %27, %30 : vector<8x8xf32>
    %32 = math.exp %31 : vector<8x8xf32>
    %cst_14 = arith.constant dense<0.000000e+00> : vector<8xf32>
    %33 = vector.multi_reduction <add>, %32, %cst_14 [1] : vector<8x8xf32> to vector<8xf32>
    %34 = vector.shape_cast %33 : vector<8xf32> to vector<8x1xf32>
    %35 = tpu.reciprocal %34 {approx = true} : vector<8x1xf32> -> vector<8x1xf32>
    %36 = vector.broadcast %35 : vector<8x1xf32> to vector<8x8xf32>
    %37 = arith.mulf %32, %36 : vector<8x8xf32>
    %38 = arith.truncf %37 : vector<8x8xf32> to vector<8x8xbf16>
    %cst_15 = arith.constant dense<0.000000e+00> : vector<8x32xf32>
    %39 = tpu.matmul %38, %16, %cst_15 {dimension_numbers = #tpu.dot_dimension_numbers<[1], [0], [0], [1], [0, 0, 1, 1], [], []>} : vector<8x8xbf16>, vector<8x32xbf16>, vector<8x32xf32> -> vector<8x32xf32>
    %40 = vector.extract_strided_slice %4 {offsets = [0, 32], sizes = [8, 32], strides = [1, 1]} : vector<8x384xf32> to vector<8x32xf32>
    %41 = arith.truncf %40 : vector<8x32xf32> to vector<8x32xbf16>
    %42 = vector.extract_strided_slice %4 {offsets = [0, 160], sizes = [8, 32], strides = [1, 1]} : vector<8x384xf32> to vector<8x32xf32>
    %43 = arith.truncf %42 : vector<8x32xf32> to vector<8x32xbf16>
    %44 = vector.extract_strided_slice %4 {offsets = [0, 288], sizes = [8, 32], strides = [1, 1]} : vector<8x384xf32> to vector<8x32xf32>
    %45 = arith.truncf %44 : vector<8x32xf32> to vector<8x32xbf16>
    %cst_16 = arith.constant dense<0.000000e+00> : vector<8x8xf32>
    %46 = tpu.matmul %41, %43, %cst_16 {dimension_numbers = #tpu.dot_dimension_numbers<[1], [1], [0], [0], [0, 0, 1, 0], [], []>} : vector<8x32xbf16>, vector<8x32xbf16>, vector<8x8xf32> -> vector<8x8xf32>
    %47 = vector.broadcast %5 : f32 to vector<8x8xf32>
    %48 = arith.mulf %46, %47 : vector<8x8xf32>
    %cst_17 = arith.constant -1.000000e+30 : f32
    %49 = vector.broadcast %cst_17 : f32 to vector<8x8xf32>
    %50 = arith.select %8, %48, %49 : vector<8x8xi1>, vector<8x8xf32>
    %cst_18 = arith.constant 5.000000e-01 : f32
    %51 = vector.broadcast %cst_18 : f32 to vector<1x8xf32>
    %52 = arith.cmpf ogt, %10, %51 : vector<1x8xf32>
    %cst_19 = arith.constant -1.000000e+09 : f32
    %53 = vector.shape_cast %52 : vector<1x8xi1> to vector<1x8xi1>
    %54 = vector.broadcast %53 : vector<1x8xi1> to vector<8x8xi1>
    %55 = vector.broadcast %cst_19 : f32 to vector<8x8xf32>
    %56 = arith.select %54, %55, %50 : vector<8x8xi1>, vector<8x8xf32>
    %cst_20 = arith.constant dense<0xFF800000> : vector<8xf32>
    %57 = vector.multi_reduction <maximumf>, %56, %cst_20 [1] : vector<8x8xf32> to vector<8xf32>
    %58 = vector.shape_cast %57 : vector<8xf32> to vector<8x1xf32>
    %59 = vector.broadcast %58 : vector<8x1xf32> to vector<8x8xf32>
    %60 = arith.subf %56, %59 : vector<8x8xf32>
    %61 = math.exp %60 : vector<8x8xf32>
    %cst_21 = arith.constant dense<0.000000e+00> : vector<8xf32>
    %62 = vector.multi_reduction <add>, %61, %cst_21 [1] : vector<8x8xf32> to vector<8xf32>
    %63 = vector.shape_cast %62 : vector<8xf32> to vector<8x1xf32>
    %64 = tpu.reciprocal %63 {approx = true} : vector<8x1xf32> -> vector<8x1xf32>
    %65 = vector.broadcast %64 : vector<8x1xf32> to vector<8x8xf32>
    %66 = arith.mulf %61, %65 : vector<8x8xf32>
    %67 = arith.truncf %66 : vector<8x8xf32> to vector<8x8xbf16>
    %cst_22 = arith.constant dense<0.000000e+00> : vector<8x32xf32>
    %68 = tpu.matmul %67, %45, %cst_22 {dimension_numbers = #tpu.dot_dimension_numbers<[1], [0], [0], [1], [0, 0, 1, 1], [], []>} : vector<8x8xbf16>, vector<8x32xbf16>, vector<8x32xf32> -> vector<8x32xf32>
    %69 = vector.extract_strided_slice %4 {offsets = [0, 64], sizes = [8, 32], strides = [1, 1]} : vector<8x384xf32> to vector<8x32xf32>
    %70 = arith.truncf %69 : vector<8x32xf32> to vector<8x32xbf16>
    %71 = vector.extract_strided_slice %4 {offsets = [0, 192], sizes = [8, 32], strides = [1, 1]} : vector<8x384xf32> to vector<8x32xf32>
    %72 = arith.truncf %71 : vector<8x32xf32> to vector<8x32xbf16>
    %73 = vector.extract_strided_slice %4 {offsets = [0, 320], sizes = [8, 32], strides = [1, 1]} : vector<8x384xf32> to vector<8x32xf32>
    %74 = arith.truncf %73 : vector<8x32xf32> to vector<8x32xbf16>
    %cst_23 = arith.constant dense<0.000000e+00> : vector<8x8xf32>
    %75 = tpu.matmul %70, %72, %cst_23 {dimension_numbers = #tpu.dot_dimension_numbers<[1], [1], [0], [0], [0, 0, 1, 0], [], []>} : vector<8x32xbf16>, vector<8x32xbf16>, vector<8x8xf32> -> vector<8x8xf32>
    %76 = vector.broadcast %5 : f32 to vector<8x8xf32>
    %77 = arith.mulf %75, %76 : vector<8x8xf32>
    %cst_24 = arith.constant -1.000000e+30 : f32
    %78 = vector.broadcast %cst_24 : f32 to vector<8x8xf32>
    %79 = arith.select %8, %77, %78 : vector<8x8xi1>, vector<8x8xf32>
    %cst_25 = arith.constant 5.000000e-01 : f32
    %80 = vector.broadcast %cst_25 : f32 to vector<1x8xf32>
    %81 = arith.cmpf ogt, %10, %80 : vector<1x8xf32>
    %cst_26 = arith.constant -1.000000e+09 : f32
    %82 = vector.shape_cast %81 : vector<1x8xi1> to vector<1x8xi1>
    %83 = vector.broadcast %82 : vector<1x8xi1> to vector<8x8xi1>
    %84 = vector.broadcast %cst_26 : f32 to vector<8x8xf32>
    %85 = arith.select %83, %84, %79 : vector<8x8xi1>, vector<8x8xf32>
    %cst_27 = arith.constant dense<0xFF800000> : vector<8xf32>
    %86 = vector.multi_reduction <maximumf>, %85, %cst_27 [1] : vector<8x8xf32> to vector<8xf32>
    %87 = vector.shape_cast %86 : vector<8xf32> to vector<8x1xf32>
    %88 = vector.broadcast %87 : vector<8x1xf32> to vector<8x8xf32>
    %89 = arith.subf %85, %88 : vector<8x8xf32>
    %90 = math.exp %89 : vector<8x8xf32>
    %cst_28 = arith.constant dense<0.000000e+00> : vector<8xf32>
    %91 = vector.multi_reduction <add>, %90, %cst_28 [1] : vector<8x8xf32> to vector<8xf32>
    %92 = vector.shape_cast %91 : vector<8xf32> to vector<8x1xf32>
    %93 = tpu.reciprocal %92 {approx = true} : vector<8x1xf32> -> vector<8x1xf32>
    %94 = vector.broadcast %93 : vector<8x1xf32> to vector<8x8xf32>
    %95 = arith.mulf %90, %94 : vector<8x8xf32>
    %96 = arith.truncf %95 : vector<8x8xf32> to vector<8x8xbf16>
    %cst_29 = arith.constant dense<0.000000e+00> : vector<8x32xf32>
    %97 = tpu.matmul %96, %74, %cst_29 {dimension_numbers = #tpu.dot_dimension_numbers<[1], [0], [0], [1], [0, 0, 1, 1], [], []>} : vector<8x8xbf16>, vector<8x32xbf16>, vector<8x32xf32> -> vector<8x32xf32>
    %98 = vector.extract_strided_slice %4 {offsets = [0, 96], sizes = [8, 32], strides = [1, 1]} : vector<8x384xf32> to vector<8x32xf32>
    %99 = arith.truncf %98 : vector<8x32xf32> to vector<8x32xbf16>
    %100 = vector.extract_strided_slice %4 {offsets = [0, 224], sizes = [8, 32], strides = [1, 1]} : vector<8x384xf32> to vector<8x32xf32>
    %101 = arith.truncf %100 : vector<8x32xf32> to vector<8x32xbf16>
    %102 = vector.extract_strided_slice %4 {offsets = [0, 352], sizes = [8, 32], strides = [1, 1]} : vector<8x384xf32> to vector<8x32xf32>
    %103 = arith.truncf %102 : vector<8x32xf32> to vector<8x32xbf16>
    %cst_30 = arith.constant dense<0.000000e+00> : vector<8x8xf32>
    %104 = tpu.matmul %99, %101, %cst_30 {dimension_numbers = #tpu.dot_dimension_numbers<[1], [1], [0], [0], [0, 0, 1, 0], [], []>} : vector<8x32xbf16>, vector<8x32xbf16>, vector<8x8xf32> -> vector<8x8xf32>
    %105 = vector.broadcast %5 : f32 to vector<8x8xf32>
    %106 = arith.mulf %104, %105 : vector<8x8xf32>
    %cst_31 = arith.constant -1.000000e+30 : f32
    %107 = vector.broadcast %cst_31 : f32 to vector<8x8xf32>
    %108 = arith.select %8, %106, %107 : vector<8x8xi1>, vector<8x8xf32>
    %cst_32 = arith.constant 5.000000e-01 : f32
    %109 = vector.broadcast %cst_32 : f32 to vector<1x8xf32>
    %110 = arith.cmpf ogt, %10, %109 : vector<1x8xf32>
    %cst_33 = arith.constant -1.000000e+09 : f32
    %111 = vector.shape_cast %110 : vector<1x8xi1> to vector<1x8xi1>
    %112 = vector.broadcast %111 : vector<1x8xi1> to vector<8x8xi1>
    %113 = vector.broadcast %cst_33 : f32 to vector<8x8xf32>
    %114 = arith.select %112, %113, %108 : vector<8x8xi1>, vector<8x8xf32>
    %cst_34 = arith.constant dense<0xFF800000> : vector<8xf32>
    %115 = vector.multi_reduction <maximumf>, %114, %cst_34 [1] : vector<8x8xf32> to vector<8xf32>
    %116 = vector.shape_cast %115 : vector<8xf32> to vector<8x1xf32>
    %117 = vector.broadcast %116 : vector<8x1xf32> to vector<8x8xf32>
    %118 = arith.subf %114, %117 : vector<8x8xf32>
    %119 = math.exp %118 : vector<8x8xf32>
    %cst_35 = arith.constant dense<0.000000e+00> : vector<8xf32>
    %120 = vector.multi_reduction <add>, %119, %cst_35 [1] : vector<8x8xf32> to vector<8xf32>
    %121 = vector.shape_cast %120 : vector<8xf32> to vector<8x1xf32>
    %122 = tpu.reciprocal %121 {approx = true} : vector<8x1xf32> -> vector<8x1xf32>
    %123 = vector.broadcast %122 : vector<8x1xf32> to vector<8x8xf32>
    %124 = arith.mulf %119, %123 : vector<8x8xf32>
    %125 = arith.truncf %124 : vector<8x8xf32> to vector<8x8xbf16>
    %cst_36 = arith.constant dense<0.000000e+00> : vector<8x32xf32>
    %126 = tpu.matmul %125, %103, %cst_36 {dimension_numbers = #tpu.dot_dimension_numbers<[1], [0], [0], [1], [0, 0, 1, 1], [], []>} : vector<8x8xbf16>, vector<8x32xbf16>, vector<8x32xf32> -> vector<8x32xf32>
    %127 = tpu.concatenate %39, %68, %97, %126 in 1 : vector<8x32xf32>, vector<8x32xf32>, vector<8x32xf32>, vector<8x32xf32> -> vector<8x128xf32>
    %c0_37 = arith.constant 0 : index
    %c0_38 = arith.constant 0 : index
    %c0_39 = arith.constant 0 : index
    %128 = vector.load %arg4[%c0_37, %c0_38, %c0_39] : memref<1x8x128xf32, #tpu.memory_space<vmem>>, vector<1x8x128xf32>
    %129 = vector.shape_cast %128 : vector<1x8x128xf32> to vector<8x128xf32>
    %130 = vector.shape_cast %127 : vector<8x128xf32> to vector<1x8x128xf32>
    tpu.vector_store %arg4[%c0_37, %c0_38, %c0_39], %130 {strides = array<i32>} : memref<1x8x128xf32, #tpu.memory_space<vmem>>, vector<1x8x128xf32>,
    return
  }
  func.func @transform_0(%arg0: i32) -> (i32, i32, i32) {
    %c0_i32 = arith.constant 0 : i32
    %c0_i32_0 = arith.constant 0 : i32
    %c0_i32_1 = arith.constant 0 : i32
    return %arg0, %c0_i32, %c0_i32_0 : i32, i32, i32
  }
  func.func @transform_1(%arg0: i32) -> (i32, i32) {
    %c0_i32 = arith.constant 0 : i32
    %c0_i32_0 = arith.constant 0 : i32
    %c0_i32_1 = arith.constant 0 : i32
    return %c0_i32, %c0_i32_0 : i32, i32
  }
  func.func @transform_2(%arg0: i32) -> (i32, i32, i32) {
    %c0_i32 = arith.constant 0 : i32
    %c0_i32_0 = arith.constant 0 : i32
    %c0_i32_1 = arith.constant 0 : i32
    return %arg0, %c0_i32, %c0_i32_0 : i32, i32, i32
  }
  func.func @transform_3(%arg0: i32) -> (i32, i32, i32) {
    %c0_i32 = arith.constant 0 : i32
    %c0_i32_0 = arith.constant 0 : i32
    %c0_i32_1 = arith.constant 0 : i32
    return %arg0, %c0_i32, %c0_i32_0 : i32, i32, i32
  }
}

</mosaic_0001>

<bundles_post_ra>
// kernel: tpu_custom_call.1
= control target key start
LH: loop header
LB: loop body
LE: loop exit
PB: predicated region body
PF: predicated region fallthrough
CT: control target
= control target key end

     0   :  { %8 = vsyncpa [#allocation3], 0  ;;  %s1714_s0 = inlined_call_operand.hbm [shape: f32[2,8,128], index: 0, kind: input, shape index: {}]   ;;  %s1715_s1 = inlined_call_operand.hbm [shape: bf16[128,384], index: 1, kind: input, shape index: {}]   ;;  %s1716_s2 = inlined_call_operand.vmem [shape: f32[2,1,8], index: 2, kind: input, shape index: {}]   ;;  %s1717_s3 = inlined_call_operand.hbm [shape: f32[2,8,128], index: 3, kind: output, shape index: {}]  }
   0x1   :  { %10 = vsyncpa [#allocation3 + $0x1], 0 }
   0x2   :  { %11 = vsyncpa [#allocation6], 0 }
   0x3   :  { %12 = vsyncpa [#allocation4], 0 }
   0x4   :  { %14 = vsyncpa [#allocation4 + $0x1], 0  ;;  %s1455_s12 = smov 0   ;;  %s1457_s13 = smov 0  }
   0x5   :  { %s1459_s14 = smov 0   ;;  %s1461_s15 = smov 0  }
   0x6 LB: > { %s1476_s16 = sadd.s32 4294967295, %s1422_s15   ;;  %s1048_s17 = sadd.s32 4294967294, %s1422_s15   ;;  %s1422_s15 = sphi %s1461_s15, %s1739_s15   ;;  %s1418_s14 = sphi %s1459_s14, %s1738_s14   ;;  %s1414_s13 = sphi %s1457_s13, %s1737_s13   ;;  %s1410_s12 = sphi %s1455_s12, %s1736_s12  }
   0x7   : > { %p40_p0 = scmp.ne.s32.totalorder %s1414_s13, %s1410_s12  ;;  %p1718_p1 = scmp.eq.s32.totalorder %s1476_s16, 0 }
   0x8   : > { %p117_p3 = scmp.eq.s32.totalorder %s1048_s17, 1  ;;  %p1049_p5 = scmp.ge.s32.totalorder %s1422_s15, 1 }
   0x9   : > { %p1485_p4 = por %p1718_p1, %p40_p0  ;;  %p124_p7 = scmp.lt.s32.totalorder %s1422_s15, 3 }
   0xa   : > { %p1490_p6 = por %p117_p3, %p40_p0  ;;  %s1424_s21 = smov [#allocation5]  }
   0xb   : > { %s1722_s18 = scalar_select %p1485_p4, 1, 0 }
   0xc   : > { %s1723_s19 = scalar_select %p1490_p6, 1, 0 }
   0xd   : > { %p1495_p8 = pnand %p1049_p5, %p124_p7  ;;  %s136_s22 = sshll.u32 %s1424_s21, 4  ;;  %s137_s22 = int_to_ptr.vmem [resolvable:$true] %s136_s22 }
   0xe   : > { %s1509_s24 = sadd.s32 1, %s1422_s15   ;;  %s27_s25 = sadd.s32 1, %s1418_s14 }
   0xf   : > { %s1724_s20 = scalar_select %p1495_p8, 1, 0 }
  0x10   : > { %p1195_p9 = pneg %p1495_p8  ;;  %s24_s26 = ssub.s32 %s1422_s15, %s1509_s24 }
  0x11   : > { %s1311_s27 = scalar_lea.vmem %s137_s22, 3072  ;;  %p1319_p5 = scmp.lt.s32.totalorder %s137_s22, %s137_s22 }
  0x12   : > { %p1504_p11 = pnand %p1195_p9, %p1718_p1  ;;  %p1312_p13 = scmp.ne.s32.totalorder %s137_s22, %s1311_s27 }
  0x13   : > { %p1320_p7 = scmp.lt.s32.totalorder %s1311_s27, %s1311_s27 }
  0x14   : > { %p1302_p12 = pneg %p1504_p11 }
  0x15   : > { %p1321_p10 = por %p1320_p7, %p1319_p5 }
  0x16   : > { %p1314_p0 = pnand %p1312_p13, %p1302_p12 }
  0x18   : > { %p1315_p3 = pneg %p1314_p0 }
  0x1a   : > { %p1322_p2 = pnand %p1321_p10, %p1315_p3 }
  0x1c   : > { %1325 = shalt.err (!%p1322_p2)
}
  0x1d   : > { %s1425_s28 = smov 192   ;;  %s1426_s29 = smov 12  }
  0x1e   : > { %1198 = dma.hbm_to_vmem [thread:$0]  (!%p1504_p11), %s1715_s1, 3072, %s137_s22, [#allocation6], %s1425_s28, %s1425_s28, %s1426_s29  }
  0x1f   : > { %p25_p9 = scmp.eq.s32.totalorder %s24_s26, 0  ;;  %p34_p12 = scmp.ne.s32.totalorder %s1418_s14, %s1414_s13 }
  0x20   : > { %p35_p10 = scmp.eq.s32.totalorder %s1422_s15, 0  ;;  %p1208_p2 = scmp.lt.s32.totalorder %s1422_s15, 2 }
  0x21   : > { %s1526_s5 = scalar_select %p25_p9, %s1418_s14, %s27_s25  }
  0x22   : > { %p36_p13 = por %p35_p10, %p34_p12  ;;  %p1726_p0 = scmp.eq.s32.totalorder %s1476_s16, 1 }
  0x23   : > { %s150_s7 = sand.u32 1, %s1418_s14   ;;  %s1053_s8 = sshll.u32 %s1422_s15, 7 }
  0x24   : > { %p1530_p3 = por %p1726_p0, %p34_p12  ;;  %s1052_s9 = sshll.u32 %s150_s7, 3 }
  0x25   : > { %s1539_s17 = scalar_lea.hbm %s1714_s0, %s1053_s8  ;;  %s154_s21 = scalar_lea.vmem [#allocation2], %s1052_s9 }
  0x26   : > { %s1727_s6 = scalar_select %p1530_p3, 1, 0 }
  0x27   : > { %s161_s22 = sshll.u32 %s154_s21, 4  ;;  %p1541_p11 = pnand %p1208_p2, %p36_p13  ;;  %s162_s22 = int_to_ptr.vmem [resolvable:$true] %s161_s22 }
  0x28   : > { %s151_s25 = scalar_lea.sflag [#allocation3], %s150_s7  ;;  %s1326_s26 = scalar_lea.hbm %s1539_s17, 128 }
  0x29   : > { %p1327_p5 = scmp.ne.s32.totalorder %s1539_s17, %s1326_s26  ;;  %p1328_p7 = pneg %p1541_p11 }
  0x2a   : > { %s1331_s29 = scalar_lea.hbm %s1714_s0, 256  ;;  %p1332_p10 = scmp.lt.s32.totalorder %s1539_s17, %s1714_s0 }
  0x2b   : > { %p1329_p9 = pnand %p1328_p7, %p1327_p5  ;;  %p1333_p2 = scmp.lt.s32.totalorder %s1331_s29, %s1326_s26 }
  0x2d   : > { %p1330_p12 = pneg %p1329_p9  ;;  %p1334_p13 = por %p1333_p2, %p1332_p10 }
  0x2f   : > { %p1335_p0 = pnand %p1334_p13, %p1330_p12 }
  0x31   : > { %1338 = shalt.err (!%p1335_p0)
}
  0x32   : > { %s1339_s8 = scalar_lea.vmem %s162_s22, 128  ;;  %s1427_s7 = smov [#allocation2]  }
  0x33   : > { %p1340_p1 = scmp.ne.s32.totalorder %s162_s22, %s1339_s8  ;;  %s1344_s9 = sshll.u32 %s1427_s7, 4  ;;  %s1345_s9 = int_to_ptr.vmem [resolvable:$false] %s1344_s9 }
  0x34   : > { %s1346_s10 = scalar_lea.vmem %s1345_s9, 256  ;;  %p1347_p5 = scmp.lt.s32.totalorder %s162_s22, %s1345_s9 }
  0x35   : > { %p1342_p6 = pnand %p1340_p1, %p1328_p7  ;;  %p1348_p9 = scmp.lt.s32.totalorder %s1346_s10, %s1339_s8 }
  0x37   : > { %p1343_p3 = pneg %p1342_p6  ;;  %p1349_p4 = por %p1348_p9, %p1347_p5 }
  0x39   : > { %p1350_p8 = pnand %p1349_p4, %p1343_p3 }
  0x3b   : > { %1353 = shalt.err (!%p1350_p8)
}
  0x3c   : > { %1202 = dma.hbm_to_vmem [thread:$0]  (!%p1541_p11), %s1539_s17, 128, %s162_s22, %s151_s25  }
  0x3d   : > { %p1729_p12 = scmp.ne.s32.totalorder %s1724_s20, 0 }
  0x3e   : > { %s1562_s11 = sand.u32 (!%p1729_p12), 1, %s1414_s13   ;;  %p1730_p1 = scmp.ne.s32.totalorder (!%p1729_p12), %s1722_s18, 0 }
  0x3f   : > { %176 = sbr.rel (%p1729_p12) target bundleno = 1274 (0x4fa), region = 32  ;;  %s1055_s21 = sshll.u32 (!%p1729_p12), %s1562_s11, 3 }
  0x40   : > { %s179_s26 = scalar_lea.sflag (!%p1729_p12), [#allocation3], %s1562_s11  ;;  %s1568_s27 = scalar_lea.vmem (!%p1729_p12), [#allocation2], %s1055_s21 }
  0x44   : > { %1397 = dma.done.wait (%p1730_p1), %s179_s26, 128  }
  0x45   : > { %1399 = vsyncadd (%p1730_p1), %s179_s26, 4294967168  ;;  %p1731_p4 = scmp.eq.s32.totalorder %s1476_s16, 0 }
  0x47   : > { %1401 = dma.done.wait (%p1731_p4), [#allocation6], 3072   ;;  %p1732_p6 = pmov %p1731_p4 }
  0x48   : > { %v1428_v0 = vmov 0   ;;  %v1252_v1 = vld [vmem:[#allocation5 + $0xac] ss:$12 sps:$4 sm:$0xff]   ;;  %v1254_v2 = vld [vmem:[#allocation5 + $0xa8] ss:$12 sps:$4 sm:$0xff]   ;;  %v1429_v19 = vmov 0.0   ;;  %v459_v44 = vlaneseq }
  0x49   : > { %1403 = vsyncadd (%p1732_p6), [#allocation6], 4294964224  ;;  %410 = vmatprep.mubr.bf16.mxu0 %v1428_v0  ;;  %378 = vmatprep.subr.bf16.mxu0 %v1252_v1  ;;  %v1255_v3 = vld [vmem:[#allocation5 + $0x94] ss:$12 sps:$4 sm:$0xff]   ;;  %v1257_v4 = vld [vmem:[#allocation5 + $0x90] ss:$12 sps:$4 sm:$0xff]  }
  0x4a   : > { %379 = vmatpush1.bf16.msra.mxu0 %v1254_v2  ;;  %v1258_v5 = vld [vmem:[#allocation5 + $0x7c] ss:$12 sps:$4 sm:$0xff]   ;;  %v1260_v6 = vld [vmem:[#allocation5 + $0x78] ss:$12 sps:$4 sm:$0xff]   ;;  %v1263_v8 = vld [vmem:[#allocation5 + $0x60] ss:$12 sps:$4 sm:$0xff]   ;;  %1119 = vmatprep.subr.bf16.mxu1 %v1429_v19 }
  0x4b   : > { %380 = vmatprep.subr.bf16.mxu0 %v1255_v3  ;;  %v1261_v7 = vld [vmem:[#allocation5 + $0x64] ss:$12 sps:$4 sm:$0xff]   ;;  %v1264_v9 = vld [vmem:[#allocation5 + $0x4c] ss:$12 sps:$4 sm:$0xff]   ;;  %v1266_v10 = vld [vmem:[#allocation5 + $0x48] ss:$12 sps:$4 sm:$0xff]  }
  0x4c   : > { %v1267_v11 = vld [vmem:[#allocation5 + $0x34] ss:$12 sps:$4 sm:$0xff]   ;;  %v1269_v12 = vld [vmem:[#allocation5 + $0x30] ss:$12 sps:$4 sm:$0xff]   ;;  %v1272_v14 = vld [vmem:[#allocation5 + $0x18] ss:$12 sps:$4 sm:$0xff]  }
  0x4d   : > { %v1270_v13 = vld [vmem:[#allocation5 + $0x1c] ss:$12 sps:$4 sm:$0xff]   ;;  %v1273_v15 = vld [vmem:[#allocation5 + $0x4] ss:$12 sps:$4 sm:$0xff]   ;;  %v1275_v16 = vld [vmem:[#allocation5] ss:$12 sps:$4 sm:$0xff]  }
  0x4e   : > { %381 = vmatpush1.bf16.msra.mxu0 %v1257_v4  ;;  %v216_v17 = vld [vmem:[%s1568_s27] sm:$0xff]  ;;  %vm1430_vm0 = vmmov 0   ;;  %vm468_vm1 = vcmask 261120   ;;  %s1431_s18 = smov 64   ;;  %s1432_s20 = smov 96   ;;  %v460_v46 = vshrl.u32 %v459_v44, 7 }
  0x4f   : > { %382 = vmatprep.subr.bf16.mxu0 %v1258_v5  ;;  %v217_v18 = vpack.c.bf16 %v216_v17, %v216_v17  ;;  %1135 = vmatprep.mubr.msk.bf16.mxu1 %vm1430_vm0, %v1429_v19  ;;  %s1433_s17 = smov 32   ;;  %v1276_v27 = vld [vmem:[#allocation5 + $0xb0] ss:$12 sps:$4 sm:$0xff]   ;;  %v1277_v28 = vld [vmem:[#allocation5 + $0x98] ss:$12 sps:$4 sm:$0xff]   ;;  %p212_p8 = scmp.lt.s32.totalorder %s1476_s16, 1 }
  0x50   : > { %1120 = vmatpush3.bf16.msra.mxu1 %v1276_v27  ;;  %v1278_v29 = vld [vmem:[#allocation5 + $0x80] ss:$12 sps:$4 sm:$0xff]   ;;  %v1279_v30 = vld [vmem:[#allocation5 + $0x68] ss:$12 sps:$4 sm:$0xff]   ;;  %v1280_v31 = vld [vmem:[#allocation5 + $0x50] ss:$12 sps:$4 sm:$0xff]  }
  0x51   : > { %1121 = vmatprep.subr.bf16.mxu1 %v1429_v19  ;;  %v1281_v32 = vld [vmem:[#allocation5 + $0x38] ss:$12 sps:$4 sm:$0xff]   ;;  %v1282_v33 = vld [vmem:[#allocation5 + $0x20] ss:$12 sps:$4 sm:$0xff]   ;;  %v1283_v34 = vld [vmem:[#allocation5 + $0x8] ss:$12 sps:$4 sm:$0xff]  }
  0x52   : > { %383 = vmatpush1.bf16.msra.mxu0 %v1260_v6  ;;  %s213_s22 = scalar_select %p212_p8, %s1476_s16, 1  ;;  %v521_v47 = vsub.s32 0, %v460_v46  ;;  %v462_v49 = vand.u32 127, %v459_v44  ;;  %vm525_vm5 = vcmask 64512   ;;  %vm541_vm6 = vcmask 1043456  }
  0x53   : > { %384 = vmatprep.subr.bf16.mxu0 %v1261_v7  ;;  %vm940_vm7 = vcmask 523264   ;;  %s1091_s29 = sshll.u32 %s1476_s16, 7  ;;  %s211_s30 = scalar_lea.vmem [#allocation7], %s1055_s21  ;;  %vm942_vm8 = vcmask 785408  }
  0x54   : > { %1122 = vmatpush3.bf16.msra.mxu1 %v1277_v28  ;;  %s214_s28 = scalar_lea.vmem %s1716_s2, %s213_s22  ;;  %vm463_vm3 = vcmp.le.s32.totalorder %v462_v49, %v460_v46  ;;  %s959_s4 = sshll.u32 %s211_s30, 4  ;;  %s960_s4 = int_to_ptr.vmem [resolvable:$true] %s959_s4 }
  0x55   : > { %1123 = vmatprep.subr.bf16.mxu1 %v1429_v19  ;;  %v464_v45 = vld [vmem:[%s214_s28] sm:$0x1]  ;;  %s1677_s9 = scalar_lea.hbm %s1717_s3, %s1091_s29  ;;  %s946_s10 = scalar_lea.sflag [#allocation4], %s1562_s11 }
  0x56   : > { %385 = vmatpush1.bf16.msra.mxu0 %v1263_v8  ;;  %vm517_vm2 = vcmp.gt.f32.partialorder %v464_v45, 0.5  ;;  %s1354_s26 = scalar_lea.vmem %s960_s4, 128  ;;  %p1733_p11 = scmp.ne.s32.totalorder %s1727_s6, 0 }
  0x57   : > { %386 = vmatprep.subr.bf16.mxu0 %v1264_v9  ;;  %v518_v48 = vsel %vm517_vm2, 1, %v1428_v0  ;;  %p1355_p3 = scmp.ne.s32.totalorder %s960_s4, %s1354_s26  ;;  %s1434_s16 = smov [#allocation7]  }
  0x58   : > { %1124 = vmatpush3.bf16.msra.mxu1 %v1278_v29  ;;  %v522_v50 = vrot.slane %v518_v48, %v521_v47  ;;  %s1358_s21 = sshll.u32 %s1434_s16, 4  ;;  %s1359_s21 = int_to_ptr.vmem [resolvable:$false] %s1358_s21 }
  0x59   : > { %1125 = vmatprep.subr.bf16.mxu1 %v1429_v19  ;;  %p1356_p7 = pnand %p1355_p3, %p1733_p11  ;;  %s1360_s27 = scalar_lea.vmem %s1359_s21, 256 }
  0x5a   : > { %387 = vmatpush1.bf16.msra.mxu0 %v1266_v10  ;;  %vm523_vm4 = vcmp.eq.s32.totalorder %v522_v50, 1  ;;  %p1361_p2 = scmp.lt.s32.totalorder %s960_s4, %s1359_s21  ;;  %p1362_p13 = scmp.lt.s32.totalorder %s1360_s27, %s1354_s26 }
  0x5b   : > { %388 = vmatprep.subr.bf16.mxu0 %v1267_v11  ;;  %p1357_p10 = pneg %p1356_p7 }
  0x5c   : > { %1126 = vmatpush3.bf16.msra.mxu1 %v1279_v30  ;;  %p1363_p0 = por %p1362_p13, %p1361_p2 }
  0x5d   : > { %1127 = vmatprep.subr.bf16.mxu1 %v1429_v19 }
  0x5e   : > { %389 = vmatpush1.bf16.msra.mxu0 %v1269_v12  ;;  %p1364_p5 = pnand %p1363_p0, %p1357_p10 }
  0x5f   : > { %390 = vmatprep.subr.bf16.mxu0 %v1270_v13 }
  0x60   : > { %1128 = vmatpush3.bf16.msra.mxu1 %v1280_v31 }
  0x61   : > { %1129 = vmatprep.subr.bf16.mxu1 %v1429_v19 }
  0x62   : > { %391 = vmatpush1.bf16.msra.mxu0 %v1272_v14 }
  0x63   : > { %392 = vmatprep.subr.bf16.mxu0 %v1273_v15 }
  0x64   : > { %1130 = vmatpush3.bf16.msra.mxu1 %v1281_v32 }
  0x65   : > { %1131 = vmatprep.subr.bf16.mxu1 %v1429_v19 }
  0x66   : > { %393 = vmatpush1.bf16.msra.mxu0 %v1275_v16 }
  0x67   : > { %1139 = vmatprep.subr.bf16.mxu0 %v1429_v19 }
  0x68   : > { %1132 = vmatpush3.bf16.msra.mxu1 %v1282_v33 }
  0x69   : > { %411 = vmatmul.mubr.bf16.vlgmr.msra.gmra.mxu0 %v217_v18  ;;  %1133 = vmatprep.subr.bf16.mxu1 %v1429_v19 }
  0x6a   : > { %1141 = vmatprep.mubr.msk.bf16.mxu0 %vm1430_vm0, %v1429_v19 }
  0x6c   : > { %1134 = vmatpush3.bf16.msra.mxu1 %v1283_v34 }
  0x6d   : > { %1145 = vmatprep.subr.bf16.mxu1 %v1429_v19 }
  0x6f   : > { %1136 = vmatmul.mubr.bf16.vlgmr.msra.gmra.mxu1 %v217_v18 }
  0x70   : > { %1147 = vmatprep.mubr.msk.bf16.mxu1 %vm1430_vm0, %v1429_v19 }
 0x129   : > { %v412_v20 = vpop.f32.mrf.mxu0 }
 0x12a   : > { %v465_v26 = vpack.c.bf16 %v412_v20, %v412_v20 }
 0x12b   : > { %v414_v21 = vpop.f32.mrf.mxu0 }
 0x12c   : > { %v466_v22 = vpack.c.bf16 %v414_v21, %v414_v21 }
 0x12d   : > { %v416_v23 = vpop.f32.mrf.mxu0 }
 0x12e   : > { %703 = vrot.lane.b32.xlu1 %v466_v22, %s1431_s18  ;;  %589 = vrot.lane.b32.xlu0 %v466_v22, %s1432_s20  ;;  %v473_v24 = vsel %vm468_vm1, %v466_v22, 0 }
 0x12f   : > { %v417_v25 = vpop.f32.mrf.mxu0  ;;  %1140 = vmatpush3.bf16.xpose.msra.mxu0 %v473_v24  ;;  %v453_v59 = vpop.f32.mrf.mxu1 }
 0x130   : > { %1151 = vmatprep.subr.bf16.mxu0 %v1429_v19  ;;  %v1628_v60 = vpack.c.bf16 %v453_v59, %v453_v59 }
 0x131   : > { %v1137_v61 = vpop.f32.mrf.mxu1 }
 0x132   : > { %701 = vrot.lane.b32.xlu1 %v465_v26, %s1431_s18  ;;  %586 = vrot.lane.b32.xlu0 %v465_v26, %s1432_s20  ;;  %v543_v62 = vsel %vm541_vm6, %v1628_v60, 0 }
 0x133   : > { %v456_v63 = vpop.f32.mrf.mxu1  ;;  %1146 = vmatpush3.bf16.msra.mxu1 %v543_v62 }
 0x134   : > { %1157 = vmatprep.subr.bf16.mxu1 %v1429_v19 }
 0x135   : > { %v1138_v0 = vpop.f32.mrf.mxu1 }
 0x136   : > { %814 = vrot.lane.b32.xlu1 %v465_v26, %s1433_s17  ;;  %816 = vrot.lane.b32.xlu0 %v466_v22, %s1433_s17 }
 0x137   : > { %1142 = vmatmul.mubr.msk.bf16.vlgmr.msra.gmra.mxu0 %vm468_vm1, %v465_v26 }
 0x138   : > { %1153 = vmatprep.mubr.msk.bf16.mxu0 %vm1430_vm0, %v1429_v19 }
 0x1a0   : > { %v590_v35 = vpop.permute.xlu0 %589  ;;  %v704_v37 = vpop.permute.xlu1 %703 }
 0x1a1   : > { %v595_v36 = vsel %vm468_vm1, %v590_v35, 0  ;;  %v709_v39 = vsel %vm468_vm1, %v704_v37, 0 }
 0x1a2   : > { %1152 = vmatpush3.bf16.xpose.msra.mxu0 %v595_v36 }
 0x1a3   : > { %1163 = vmatprep.subr.bf16.mxu0 %v1429_v19 }
 0x1a4   : > { %v587_v38 = vpop.permute.xlu0 %586  ;;  %v702_v41 = vpop.permute.xlu1 %701 }
 0x1a8   : > { %v817_v40 = vpop.permute.xlu0 %816  ;;  %v815_v43 = vpop.permute.xlu1 %814 }
 0x1a9   : > { %1154 = vmatmul.mubr.msk.bf16.vlgmr.msra.gmra.mxu0 %vm468_vm1, %v587_v38  ;;  %v822_v42 = vsel %vm468_vm1, %v817_v40, 0 }
 0x1aa   : > { %1164 = vmatpush3.bf16.xpose.msra.mxu0 %v709_v39  ;;  %1165 = vmatprep.mubr.msk.bf16.mxu0 %vm1430_vm0, %v1429_v19 }
 0x1ab   : > { %1175 = vmatprep.subr.bf16.mxu0 %v1429_v19 }
 0x1b1   : > { %1166 = vmatmul.mubr.msk.bf16.vlgmr.msra.gmra.mxu0 %vm468_vm1, %v702_v41 }
 0x1b2   : > { %1176 = vmatpush3.bf16.xpose.msra.mxu0 %v822_v42  ;;  %1177 = vmatprep.mubr.msk.bf16.mxu0 %vm1430_vm0, %v1429_v19 }
 0x1b9   : > { %1178 = vmatmul.mubr.msk.bf16.vlgmr.msra.gmra.mxu0 %vm468_vm1, %v815_v43 }
 0x1f7   : > { %v509_v51 = vpop.f32.mrf.mxu0 }
 0x1f8   : > { %v515_v52 = vmul.f32 0.088388346, %v509_v51 }
 0x1f9   : > { %v1143_v53 = vpop.f32.mrf.mxu0 }
 0x1fa   : > { %v516_v54 = vsel %vm463_vm3, %v515_v52, -1e+30 }
 0x1fb   : > { %v512_v55 = vpop.f32.mrf.mxu0  ;;  %v524_v56 = vsel %vm523_vm4, -1e+09, %v516_v54 }
 0x1fc   : > { %v526_v57 = vsel %vm525_vm5, %v524_v56, -inf }
 0x1fd   : > { %527 = vmax.xlane.f32.xlu0 %v526_v57  ;;  %v1144_v58 = vpop.f32.mrf.mxu0 }
 0x269   : > { %v631_v1 = vpop.f32.mrf.mxu0 }
 0x26a   : > { %v637_v2 = vmul.f32 0.088388346, %v631_v1 }
 0x26b   : > { %v1155_v3 = vpop.f32.mrf.mxu0 }
 0x26c   : > { %v638_v4 = vsel %vm463_vm3, %v637_v2, -1e+30 }
 0x26d   : > { %v634_v5 = vpop.f32.mrf.mxu0  ;;  %v639_v6 = vsel %vm523_vm4, -1e+09, %v638_v4 }
 0x26e   : > { %v640_v7 = vsel %vm525_vm5, %v639_v6, -inf }
 0x26f   : > { %641 = vmax.xlane.f32.xlu1 %v640_v7  ;;  %v1156_v8 = vpop.f32.mrf.mxu0 }
 0x271   : > { %v745_v9 = vpop.f32.mrf.mxu0 }
 0x272   : > { %v751_v10 = vmul.f32 0.088388346, %v745_v9 }
 0x273   : > { %v1167_v11 = vpop.f32.mrf.mxu0 }
 0x274   : > { %v752_v12 = vsel %vm463_vm3, %v751_v10, -1e+30 }
 0x275   : > { %v748_v13 = vpop.f32.mrf.mxu0  ;;  %v753_v14 = vsel %vm523_vm4, -1e+09, %v752_v12 }
 0x276   : > { %v754_v15 = vsel %vm525_vm5, %v753_v14, -inf }
 0x277   : > { %755 = vmax.xlane.f32.xlu0 %v754_v15  ;;  %v1168_v16 = vpop.f32.mrf.mxu0 }
 0x279   : > { %v858_v17 = vpop.f32.mrf.mxu0 }
 0x27a   : > { %v864_v18 = vmul.f32 0.088388346, %v858_v17 }
 0x27b   : > { %v1179_v20 = vpop.f32.mrf.mxu0 }
 0x27c   : > { %v865_v21 = vsel %vm463_vm3, %v864_v18, -1e+30 }
 0x27d   : > { %v861_v22 = vpop.f32.mrf.mxu0  ;;  %v866_v23 = vsel %vm523_vm4, -1e+09, %v865_v21 }
 0x27e   : > { %v867_v24 = vsel %vm525_vm5, %v866_v23, -inf }
 0x27f   : > { %868 = vmax.xlane.f32.xlu0 %v867_v24  ;;  %v1180_v25 = vpop.f32.mrf.mxu0 }
 0x286   : > { %v528_v26 = vpop.xlane.xlu0 %527 }
 0x287   : > { %v529_v27 = vsub.f32 %v524_v56, %v528_v26 }
 0x289   : > { %v530_v28 = vmul.f32 1.442695, %v529_v27 }
 0x28b   : > { %1284 = vpow2.f32 %v530_v28 }
 0x298   : > { %v1285_v29 = vpop.eup %1284 }
 0x299   : > { %v532_v30 = vsel %vm525_vm5, %v1285_v29, 0.0 }
 0x29a   : > { %533 = vadd.xlane.f32.xlu1 %v532_v30 }
 0x2ab   : > { %653 = vrot.lane.b32.xlu1 %v1628_v60, %s1432_s20 }
 0x2f8   : > { %v642_v31 = vpop.xlane.xlu1 %641 }
 0x2f9   : > { %v643_v32 = vsub.f32 %v639_v6, %v642_v31 }
 0x2fb   : > { %v644_v33 = vmul.f32 1.442695, %v643_v32 }
 0x2fd   : > { %1286 = vpow2.f32 %v644_v33 }
 0x300   : > { %v756_v34 = vpop.xlane.xlu0 %755 }
 0x301   : > { %v757_v35 = vsub.f32 %v753_v14, %v756_v34 }
 0x303   : > { %v758_v36 = vmul.f32 1.442695, %v757_v35 }
 0x305   : > { %1288 = vpow2.f32 %v758_v36 }
 0x308   : > { %v869_v37 = vpop.xlane.xlu0 %868 }
 0x309   : > { %v870_v38 = vsub.f32 %v866_v23, %v869_v37 }
 0x30a   : > { %v1287_v39 = vpop.eup %1286 }
 0x30b   : > { %v871_v40 = vmul.f32 1.442695, %v870_v38  ;;  %v646_v41 = vsel %vm525_vm5, %v1287_v39, 0.0 }
 0x30c   : > { %647 = vadd.xlane.f32.xlu0 %v646_v41 }
 0x30d   : > { %1290 = vpow2.f32 %v871_v40 }
 0x312   : > { %v1289_v42 = vpop.eup %1288 }
 0x313   : > { %v760_v43 = vsel %vm525_vm5, %v1289_v42, 0.0 }
 0x314   : > { %761 = vadd.xlane.f32.xlu1 %v760_v43 }
 0x31a   : > { %v1291_v44 = vpop.eup %1290 }
 0x31b   : > { %v873_v45 = vsel %vm525_vm5, %v1291_v44, 0.0 }
 0x31c   : > { %874 = vadd.xlane.f32.xlu0 %v873_v45 }
 0x323   : > { %v534_v46 = vpop.xlane.xlu1 %533 }
 0x324   : > { %1292 = vrcp.f32 %v534_v46 }
 0x325   : > { %879 = vrot.lane.b32.xlu1 %v1628_v60, %s1433_s17 }
 0x327   : > { %v654_v48 = vpop.permute.xlu1 %653 }
 0x328   : > { %v659_v51 = vsel %vm541_vm6, %v654_v48, 0 }
 0x331   : > { %v1293_v47 = vpop.eup %1292 }
 0x332   : > { %766 = vrot.lane.b32.xlu0 %v1628_v60, %s1431_s18  ;;  %v536_v49 = vmul.f32 %v1293_v47, %v1285_v29 }
 0x334   : > { %v537_v50 = vpack.c.bf16 %v536_v49, %v536_v49 }
 0x336   : > { %1148 = vmatmul.mubr.msk.bf16.vlgmr.msra.gmra.mxu1 %vm525_vm5, %v537_v50 }
 0x337   : > { %1158 = vmatpush3.bf16.msra.mxu1 %v659_v51  ;;  %1159 = vmatprep.mubr.msk.bf16.mxu1 %vm1430_vm0, %v1429_v19 }
 0x338   : > { %1169 = vmatprep.subr.bf16.mxu1 %v1429_v19 }
 0x395   : > { %v648_v52 = vpop.xlane.xlu0 %647 }
 0x396   : > { %1294 = vrcp.f32 %v648_v52 }
 0x39d   : > { %v762_v53 = vpop.xlane.xlu1 %761 }
 0x39e   : > { %1296 = vrcp.f32 %v762_v53 }
 0x3a1   : > { %v880_v62 = vpop.permute.xlu1 %879 }
 0x3a2   : > { %v885_v0 = vsel %vm541_vm6, %v880_v62, 0 }
 0x3a3   : > { %v1295_v54 = vpop.eup %1294 }
 0x3a4   : > { %v650_v55 = vmul.f32 %v1295_v54, %v1287_v39 }
 0x3a5   : > { %v875_v56 = vpop.xlane.xlu0 %874 }
 0x3a6   : > { %1298 = vrcp.f32 %v875_v56  ;;  %v651_v57 = vpack.c.bf16 %v650_v55, %v650_v55 }
 0x3a8   : > { %1160 = vmatmul.mubr.msk.bf16.vlgmr.msra.gmra.mxu1 %vm525_vm5, %v651_v57 }
 0x3a9   : > { %v767_v58 = vpop.permute.xlu0 %766  ;;  %1171 = vmatprep.mubr.msk.bf16.mxu1 %vm1430_vm0, %v1429_v19 }
 0x3aa   : > { %v772_v59 = vsel %vm541_vm6, %v767_v58, 0 }
 0x3ab   : > { %v1297_v60 = vpop.eup %1296  ;;  %1170 = vmatpush3.bf16.msra.mxu1 %v772_v59 }
 0x3ac   : > { %1181 = vmatprep.subr.bf16.mxu1 %v1429_v19  ;;  %v764_v61 = vmul.f32 %v1297_v60, %v1289_v42 }
 0x3ae   : > { %v765_v63 = vpack.c.bf16 %v764_v61, %v764_v61 }
 0x3b0   : > { %1172 = vmatmul.mubr.msk.bf16.vlgmr.msra.gmra.mxu1 %vm525_vm5, %v765_v63 }
 0x3b1   : > { %1182 = vmatpush3.bf16.msra.mxu1 %v885_v0  ;;  %1183 = vmatprep.mubr.msk.bf16.mxu1 %vm1430_vm0, %v1429_v19 }
 0x3b3   : > { %v1299_v1 = vpop.eup %1298 }
 0x3b4   : > { %v877_v2 = vmul.f32 %v1299_v1, %v1291_v44 }
 0x3b6   : > { %v878_v3 = vpack.c.bf16 %v877_v2, %v877_v2 }
 0x3b8   : > { %1184 = vmatmul.mubr.msk.bf16.vlgmr.msra.gmra.mxu1 %vm525_vm5, %v878_v3 }
 0x3f6   : > { %v579_v4 = vpop.f32.mrf.mxu1 }
 0x3f8   : > { %v1149_v5 = vpop.f32.mrf.mxu1 }
 0x3fa   : > { %v582_v6 = vpop.f32.mrf.mxu1 }
 0x3fc   : > { %v1150_v7 = vpop.f32.mrf.mxu1 }
 0x468   : > { %v695_v8 = vpop.f32.mrf.mxu1 }
 0x469   : > { %928 = vrot.lane.b32.xlu1 %v695_v8, %s1433_s17 }
 0x46a   : > { %v1161_v9 = vpop.f32.mrf.mxu1 }
 0x46c   : > { %v698_v10 = vpop.f32.mrf.mxu1 }
 0x46e   : > { %v1162_v11 = vpop.f32.mrf.mxu1 }
 0x470   : > { %v808_v12 = vpop.f32.mrf.mxu1 }
 0x471   : > { %932 = vrot.lane.b32.xlu0 %v808_v12, %s1431_s18 }
 0x472   : > { %v1173_v19 = vpop.f32.mrf.mxu1 }
 0x474   : > { %v811_v13 = vpop.f32.mrf.mxu1 }
 0x476   : > { %v1174_v14 = vpop.f32.mrf.mxu1 }
 0x478   : > { %v921_v15 = vpop.f32.mrf.mxu1 }
 0x479   : > { %936 = vrot.lane.b32.xlu1 %v921_v15, %s1432_s20 }
 0x47a   : > { %v1185_v16 = vpop.f32.mrf.mxu1 }
 0x47c   : > { %v924_v17 = vpop.f32.mrf.mxu1 }
 0x47e   : > { %v1186_v18 = vpop.f32.mrf.mxu1 }
 0x4db   : > { %v929_v20 = vpop.permute.xlu1 %928 }
 0x4dc   : > { %v939_v22 = vsel %vm468_vm1, %v579_v4, %v929_v20 }
 0x4e3   : > { %v933_v21 = vpop.permute.xlu0 %932 }
 0x4e4   : > { %v941_v23 = vsel %vm940_vm7, %v939_v22, %v933_v21 }
 0x4eb   : > { %v937_v24 = vpop.permute.xlu1 %936 }
 0x4ec   : > { %v943_v25 = vsel %vm942_vm8, %v941_v23, %v937_v24 }
 0x4ed   : > { %944 = vst [vmem:[%s211_s30] sm:$0xff] %v943_v25 }
 0x4ee   : > { %1367 = shalt.err (!%p1364_p5)
}
 0x4ef   : > { %s1368_s18 = scalar_lea.hbm %s1677_s9, 128  ;;  %s1372_s17 = scalar_lea.hbm %s1717_s3, 256 }
 0x4f0   : > { %p1369_p9 = scmp.ne.s32.totalorder %s1677_s9, %s1368_s18  ;;  %p1373_p4 = scmp.lt.s32.totalorder %s1677_s9, %s1717_s3 }
 0x4f1   : > { %p1374_p6 = scmp.lt.s32.totalorder %s1372_s17, %s1368_s18 }
 0x4f2   : > { %p1370_p12 = pnand %p1369_p9, %p1733_p11 }
 0x4f3   : > { %p1375_p8 = por %p1374_p6, %p1373_p4 }
 0x4f4   : > { %p1371_p1 = pneg %p1370_p12 }
 0x4f6   : > { %p1376_p3 = pnand %p1375_p8, %p1371_p1 }
 0x4f8   : > { %1379 = shalt.err (!%p1376_p3)
}
 0x4f9   : > { %1193 = dma.vmem_to_hbm [thread:$0]  (%p1733_p11), %s960_s4, 128, %s1677_s9, %s946_s10  }
 0x4fa PF: > { %s971_s25 = sand.u32 1, %s1410_s12   ;;  %p1734_p7 = scmp.ne.s32.totalorder %s1723_s19, 0 }
 0x4fb   : > { %p1735_p10 = scmp.ge.s32.totalorder %s1422_s15, 2  ;;  %s972_s28 = scalar_lea.sflag [#allocation4], %s971_s25 }
 0x4fd   : > { %p1204_p2 = pnand %p1735_p10, %p1734_p7 }
 0x4ff   : > { %p1205_p13 = pneg %p1204_p2 }
 0x501   : > { %1405 = dma.done.wait (%p1205_p13), %s972_s28, 128  }
 0x502   : > { %1407 = vsyncadd (%p1205_p13), %s972_s28, 4294967168  ;;  %p17_p0 = scmp.ge.s32.totalorder %s1509_s24, 4   ;;  %s1736_s12 = smov %s1414_s13 }
 0x503   : > { %s1737_s13 = smov %s1418_s14  ;;  %s1738_s14 = smov %s1526_s5 }
 0x504   : > { %s1739_s15 = smov %s1509_s24  ;;  %19 = sbr.rel (!%p17_p0) target bundleno = 6 (0x6), region = 84 }
 0x509   :  { %977 = vsyncpa [#allocation3], 1 }
 0x50a   :  { %979 = vsyncpa [#allocation3 + $0x1], 1 }
 0x50b   :  { %980 = vsyncpa [#allocation6], 1 }
 0x50c   :  { %981 = vsyncpa [#allocation4], 1 }
 0x50d   :  { %983 = vsyncpa [#allocation4 + $0x1], 1 }

</bundles_post_ra>
